<compile_context>
chip_gen: v7x
topology: tpu7x:2x2x1
jax: 0.10.0
libtpu: 0.0.40
codegen_flags: <defaults>
</compile_context>

<pallas_src>
import functools

import jax
import jax.numpy as jnp
from jax.experimental import pallas as pl
from jax.experimental.pallas import tpu as pltpu


def _round_up(x, m):
    return ((x + m - 1) // m) * m


# ---------------------------------------------------------------------------
# Kernel: whole network fused, per-layer-padded weights, batch-tiled grid.
# ---------------------------------------------------------------------------
def _fused_mlp_kernel(*refs, num_layers, relu_flags, compute_dtype):
    """refs = (x_ref, w0, b0, w1, b1, ..., w_{L-1}, b_{L-1}, o_ref).

    x_ref : (TB, Fin0)       padded activation tile for this batch block
    w_l   : (Fin_l, Fout_l)  per-layer padded weights, (in, out) layout
    b_l   : (1, Fout_l)      per-layer padded bias (tiny masked sublane load; ok)
    o_ref : (TB, Fout_last)  lane-dense output tile (multiple of 128 lanes)

    Padded feature LANES stay exactly 0 through every layer (padded W rows/cols
    and bias lanes are zero; ReLU keeps 0).  Padded batch ROWS become `b` after
    the first bias add and then carry junk — they are sliced off in the wrapper
    and must never be reused.
    """
    x_ref = refs[0]
    o_ref = refs[-1]
    param_refs = refs[1:-1]

    h = x_ref[...]
    for l in range(num_layers):                     # static -> fully unrolled
        w_ref = param_refs[2 * l]
        b_ref = param_refs[2 * l + 1]
        # bf16 operands hit the native MXU path on v6e/v7x; accumulate in f32.
        h = jnp.dot(h.astype(compute_dtype), w_ref[...],
                    preferred_element_type=jnp.float32)
        h = h + b_ref[...]                          # (1, Fout) broadcast over TB
        if relu_flags[l]:
            h = jnp.maximum(h, 0.0)                 # VPU work hidden under MXU
    o_ref[...] = h.astype(o_ref.dtype)


# ---------------------------------------------------------------------------
# Init-time parameter preparation (done ONCE, reused across forward calls).
# ---------------------------------------------------------------------------
def prepare_padded_params(params, compute_dtype=jnp.bfloat16):
    """params: list of (w:(fin,fout) f32, b:(fout,) f32).
    Returns flat [w0_pad, b0_pad, w1_pad, b1_pad, ...] with per-layer 128-lane
    padding; weights cast to `compute_dtype`, biases kept in f32 (added after
    the f32 accumulation)."""
    padded = []
    for w, b in params:
        fin, fout = w.shape
        finp, foutp = _round_up(fin, 128), _round_up(fout, 128)
        w_pad = (jnp.zeros((finp, foutp), compute_dtype)
                 .at[:fin, :fout].set(w.astype(compute_dtype)))
        b_pad = jnp.zeros((1, foutp), jnp.float32).at[0, :fout].set(b)
        padded += [w_pad, b_pad]
    return padded


# ---------------------------------------------------------------------------
# Forward: pads the activations, launches the single fused pallas_call.
# ---------------------------------------------------------------------------
def fused_mlp_forward(x, padded_params, *, relu_flags, out_features,
                      compute_dtype=jnp.bfloat16, batch_tile=256):
    B, in_features = x.shape
    num_layers = len(relu_flags)
    assert len(padded_params) == 2 * num_layers

    fin0_p = padded_params[0].shape[0]
    fout_last_p = padded_params[-2].shape[1]

    # Batch tiling: single sublane-aligned tile at toy sizes; >=256-row tiles
    # at realistic sizes so there is something to software-pipeline and to
    # shard across v7x's two TensorCores.
    if B > batch_tile:
        TB = batch_tile
    else:
        TB = _round_up(B, 8)
    Bp = _round_up(B, TB)
    grid = (Bp // TB,)

    x_pad = jnp.zeros((Bp, fin0_p), jnp.float32).at[:B, :in_features].set(x)

    in_specs = [pl.BlockSpec((TB, fin0_p), lambda i: (i, 0))]
    for l in range(num_layers):
        w = padded_params[2 * l]
        b = padded_params[2 * l + 1]
        # Constant block index -> parameters stay VMEM-resident across tiles.
        in_specs.append(pl.BlockSpec(w.shape, lambda i: (0, 0)))
        in_specs.append(pl.BlockSpec(b.shape, lambda i: (0, 0)))
    out_spec = pl.BlockSpec((TB, fout_last_p), lambda i: (i, 0))

    # VMEM budget (double-buffer everything conservatively); cap at 64 MiB so
    # the same plan also fits v7x's smaller physical VMEM.
    param_bytes = sum(int(p.size) * p.dtype.itemsize for p in padded_params)
    widths = [fin0_p] + [padded_params[2 * l].shape[1] for l in range(num_layers)]
    vmem_needed = (2 * param_bytes
                   + 2 * 4 * TB * fin0_p
                   + 2 * 4 * TB * fout_last_p
                   + 2 * 4 * TB * max(widths))
    vmem_limit = int(min(max(vmem_needed + (2 << 20), 16 << 20), 64 << 20))

    flops = 2 * Bp * sum(padded_params[2 * l].shape[0] * padded_params[2 * l].shape[1]
                         for l in range(num_layers))
    bytes_accessed = 4 * Bp * (fin0_p + fout_last_p) + param_bytes

    kernel = functools.partial(_fused_mlp_kernel,
                               num_layers=num_layers,
                               relu_flags=tuple(relu_flags),
                               compute_dtype=compute_dtype)

    out_pad = pl.pallas_call(
        kernel,
        out_shape=jax.ShapeDtypeStruct((Bp, fout_last_p), jnp.float32),
        grid=grid,
        in_specs=in_specs,
        out_specs=out_spec,
        compiler_params=pltpu.CompilerParams(
            dimension_semantics=("parallel",),   # uses both TCs on v7x; no-op on v5e/v6e
            vmem_limit_bytes=vmem_limit,
        ),
        cost_estimate=pl.CostEstimate(
            flops=int(flops), transcendentals=0,
            bytes_accessed=int(bytes_accessed)),
    )(x_pad, *padded_params)

    return out_pad[:B, :out_features]


# ---------------------------------------------------------------------------
# NeuralNet: mirrors the PyTorch module's layer construction exactly.
# ---------------------------------------------------------------------------
def build_layer_plan(input_size, hidden_size, num_classes, hidden_layers):
    plan = []
    layer_input_size = hidden_size
    plan.append(("linear", input_size, hidden_size))
    plan.append(("relu",))
    for l in hidden_layers:
        if l["type"] == "ReLU":
            plan.append(("relu",))
        elif l["type"] == "Linear":
            plan.append(("linear", layer_input_size, l["output_size"]))
            layer_input_size = l["output_size"]
    plan.append(("relu",))
    # NOTE: like the PyTorch module, this assumes the last hidden_layers entry
    # is a Linear (it reads hidden_layers[-1]['output_size']).
    plan.append(("linear", hidden_layers[-1]["output_size"], num_classes))
    return plan


def collapse_plan(plan):
    """Collapse to [(fin, fout, relu_after)]; runs of ReLUs are idempotent."""
    collapsed = []
    i, n = 0, len(plan)
    while i < n:
        assert plan[i][0] == "linear"
        _, fin, fout = plan[i]
        i += 1
        relu = False
        while i < n and plan[i][0] == "relu":
            relu = True
            i += 1
        collapsed.append((fin, fout, relu))
    return collapsed


def init_params(collapsed_plan, key):
    """PyTorch-style uniform(-1/sqrt(fin), 1/sqrt(fin)) init, w as (fin, fout)."""
    params = []
    for fin, fout, _ in collapsed_plan:
        key, kw, kb = jax.random.split(key, 3)
        bound = 1.0 / (fin ** 0.5)
        w = jax.random.uniform(kw, (fin, fout), jnp.float32, -bound, bound)
        b = jax.random.uniform(kb, (fout,), jnp.float32, -bound, bound)
        params.append((w, b))
    return params


def neuralnet_reference(x, params, relu_flags, compute_dtype=jnp.float32):
    """Pure-JAX reference mirroring the kernel's compute dtype (f32 accumulate)."""
    h = x
    for (w, b), relu in zip(params, relu_flags):
        h = jnp.dot(h.astype(compute_dtype), w.astype(compute_dtype),
                    preferred_element_type=jnp.float32,
                    precision=jax.lax.Precision.HIGHEST) + b
        if relu:
            h = jnp.maximum(h, 0.0)
    return h


# ---------------------------------------------------------------------------
if __name__ == "__main__":
    input_size = 200          # pads to 256 lanes; hidden layers pad to 128
    hidden_size = 32
    num_classes = 10
    hidden_layers = [
        {"type": "Linear", "output_size": 64},
        {"type": "ReLU"},
        {"type": "Linear", "output_size": 32},
    ]
    batch = 8

    plan = build_layer_plan(input_size, hidden_size, num_classes, hidden_layers)
    collapsed = collapse_plan(plan)

    root = jax.random.PRNGKey(0)
    k_params, k_x, k_x_big = jax.random.split(root, 3)
    params = init_params(collapsed, k_params)
    relu_flags = tuple(r for (_, _, r) in collapsed)
    out_features = collapsed[-1][1]

    x = jax.random.normal(k_x, (batch, input_size), jnp.float32)

    # ---- f32 operands (exact semantics of the PyTorch module) ----
    padded_f32 = prepare_padded_params(params, compute_dtype=jnp.float32)
    fwd_f32 = jax.jit(functools.partial(
        fused_mlp_forward, relu_flags=relu_flags, out_features=out_features,
        compute_dtype=jnp.float32))
    out_f32 = jax.block_until_ready(fwd_f32(x, padded_f32))
    ref_f32 = neuralnet_reference(x, params, relu_flags, jnp.float32)
    assert out_f32.shape == (batch, num_classes)
    assert jnp.allclose(out_f32, ref_f32, atol=5e-4, rtol=5e-4)

    # ---- bf16 operands (native MXU path on v6e/v7x), f32 accumulation ----
    padded_bf16 = prepare_padded_params(params, compute_dtype=jnp.bfloat16)
    fwd_bf16 = jax.jit(functools.partial(
        fused_mlp_forward, relu_flags=relu_flags, out_features=out_features,
        compute_dtype=jnp.bfloat16))
    out_bf16 = jax.block_until_ready(fwd_bf16(x, padded_bf16))
    ref_bf16 = neuralnet_reference(x, params, relu_flags, jnp.bfloat16)
    assert out_bf16.shape == (batch, num_classes)
    assert jnp.allclose(out_bf16, ref_bf16, atol=1e-3, rtol=1e-3)   # vs bf16-mirrored ref
    assert jnp.allclose(out_bf16, ref_f32, atol=5e-2, rtol=5e-2)    # vs f32 module semantics

    # ---- exercise the batch-tiled ("parallel") grid path ----
    x_big = jax.random.normal(k_x_big, (300, input_size), jnp.float32)
    out_big = jax.block_until_ready(fused_mlp_forward(
        x_big, padded_bf16, relu_flags=relu_flags, out_features=out_features,
        compute_dtype=jnp.bfloat16, batch_tile=128))
    ref_big = neuralnet_reference(x_big, params, relu_flags, jnp.bfloat16)
    assert out_big.shape == (300, num_classes)
    assert jnp.allclose(out_big, ref_big, atol=1e-3, rtol=1e-3)

    print("KERNEL_OK")
</pallas_src>

<mosaic_0001>
module attributes {stable_mosaic.version = 11 : i64} {
  func.func @_fused_mlp_kernel(%arg0: i32, %arg1: memref<8x256xf32, #tpu.memory_space<vmem>>, %arg2: memref<256x128xf32, #tpu.memory_space<vmem>>, %arg3: memref<1x128xf32, #tpu.memory_space<vmem>>, %arg4: memref<128x128xf32, #tpu.memory_space<vmem>>, %arg5: memref<1x128xf32, #tpu.memory_space<vmem>>, %arg6: memref<128x128xf32, #tpu.memory_space<vmem>>, %arg7: memref<1x128xf32, #tpu.memory_space<vmem>>, %arg8: memref<128x128xf32, #tpu.memory_space<vmem>>, %arg9: memref<1x128xf32, #tpu.memory_space<vmem>>, %arg10: memref<8x128xf32, #tpu.memory_space<vmem>>) attributes {dimension_semantics = [#tpu.dimension_semantics<parallel>], iteration_bounds = array<i64: 1>, scalar_prefetch = 0 : i64, scratch_operands = 0 : i64, tpu.core_type = #tpu.core_type<tc>, window_params = [{transform_indices = @transform_0, window_bounds = array<i64: 8, 256>}, {pipeline_mode = #tpu.pipeline_mode<synchronous>, transform_indices = @transform_1, window_bounds = array<i64: 256, 128>}, {pipeline_mode = #tpu.pipeline_mode<synchronous>, transform_indices = @transform_2, window_bounds = array<i64: 1, 128>}, {pipeline_mode = #tpu.pipeline_mode<synchronous>, transform_indices = @transform_3, window_bounds = array<i64: 128, 128>}, {pipeline_mode = #tpu.pipeline_mode<synchronous>, transform_indices = @transform_4, window_bounds = array<i64: 1, 128>}, {pipeline_mode = #tpu.pipeline_mode<synchronous>, transform_indices = @transform_5, window_bounds = array<i64: 128, 128>}, {pipeline_mode = #tpu.pipeline_mode<synchronous>, transform_indices = @transform_6, window_bounds = array<i64: 1, 128>}, {pipeline_mode = #tpu.pipeline_mode<synchronous>, transform_indices = @transform_7, window_bounds = array<i64: 128, 128>}, {pipeline_mode = #tpu.pipeline_mode<synchronous>, transform_indices = @transform_8, window_bounds = array<i64: 1, 128>}, {transform_indices = @transform_9, window_bounds = array<i64: 8, 128>}]} {
    %c0 = arith.constant 0 : index
    %c0_0 = arith.constant 0 : index
    %0 = vector.load %arg1[%c0, %c0_0] : memref<8x256xf32, #tpu.memory_space<vmem>>, vector<8x256xf32>
    %c0_1 = arith.constant 0 : index
    %c0_2 = arith.constant 0 : index
    %1 = vector.load %arg2[%c0_1, %c0_2] : memref<256x128xf32, #tpu.memory_space<vmem>>, vector<256x128xf32>
    %cst = arith.constant dense<0.000000e+00> : vector<8x128xf32>
    %2 = tpu.matmul %0, %1, %cst {dimension_numbers = #tpu.dot_dimension_numbers<[1], [0], [0], [1], [0, 0, 1, 1], [], []>} : vector<8x256xf32>, vector<256x128xf32>, vector<8x128xf32> -> vector<8x128xf32>
    %c0_3 = arith.constant 0 : index
    %c0_4 = arith.constant 0 : index
    %3 = vector.load %arg3[%c0_3, %c0_4] : memref<1x128xf32, #tpu.memory_space<vmem>>, vector<1x128xf32>
    %4 = vector.broadcast %3 : vector<1x128xf32> to vector<8x128xf32>
    %5 = arith.addf %2, %4 : vector<8x128xf32>
    %cst_5 = arith.constant 0.000000e+00 : f32
    %6 = vector.broadcast %cst_5 : f32 to vector<8x128xf32>
    %7 = arith.maximumf %5, %6 : vector<8x128xf32>
    %c0_6 = arith.constant 0 : index
    %c0_7 = arith.constant 0 : index
    %8 = vector.load %arg4[%c0_6, %c0_7] : memref<128x128xf32, #tpu.memory_space<vmem>>, vector<128x128xf32>
    %cst_8 = arith.constant dense<0.000000e+00> : vector<8x128xf32>
    %9 = tpu.matmul %7, %8, %cst_8 {dimension_numbers = #tpu.dot_dimension_numbers<[1], [0], [0], [1], [0, 0, 1, 1], [], []>} : vector<8x128xf32>, vector<128x128xf32>, vector<8x128xf32> -> vector<8x128xf32>
    %c0_9 = arith.constant 0 : index
    %c0_10 = arith.constant 0 : index
    %10 = vector.load %arg5[%c0_9, %c0_10] : memref<1x128xf32, #tpu.memory_space<vmem>>, vector<1x128xf32>
    %11 = vector.broadcast %10 : vector<1x128xf32> to vector<8x128xf32>
    %12 = arith.addf %9, %11 : vector<8x128xf32>
    %cst_11 = arith.constant 0.000000e+00 : f32
    %13 = vector.broadcast %cst_11 : f32 to vector<8x128xf32>
    %14 = arith.maximumf %12, %13 : vector<8x128xf32>
    %c0_12 = arith.constant 0 : index
    %c0_13 = arith.constant 0 : index
    %15 = vector.load %arg6[%c0_12, %c0_13] : memref<128x128xf32, #tpu.memory_space<vmem>>, vector<128x128xf32>
    %cst_14 = arith.constant dense<0.000000e+00> : vector<8x128xf32>
    %16 = tpu.matmul %14, %15, %cst_14 {dimension_numbers = #tpu.dot_dimension_numbers<[1], [0], [0], [1], [0, 0, 1, 1], [], []>} : vector<8x128xf32>, vector<128x128xf32>, vector<8x128xf32> -> vector<8x128xf32>
    %c0_15 = arith.constant 0 : index
    %c0_16 = arith.constant 0 : index
    %17 = vector.load %arg7[%c0_15, %c0_16] : memref<1x128xf32, #tpu.memory_space<vmem>>, vector<1x128xf32>
    %18 = vector.broadcast %17 : vector<1x128xf32> to vector<8x128xf32>
    %19 = arith.addf %16, %18 : vector<8x128xf32>
    %cst_17 = arith.constant 0.000000e+00 : f32
    %20 = vector.broadcast %cst_17 : f32 to vector<8x128xf32>
    %21 = arith.maximumf %19, %20 : vector<8x128xf32>
    %c0_18 = arith.constant 0 : index
    %c0_19 = arith.constant 0 : index
    %22 = vector.load %arg8[%c0_18, %c0_19] : memref<128x128xf32, #tpu.memory_space<vmem>>, vector<128x128xf32>
    %cst_20 = arith.constant dense<0.000000e+00> : vector<8x128xf32>
    %23 = tpu.matmul %21, %22, %cst_20 {dimension_numbers = #tpu.dot_dimension_numbers<[1], [0], [0], [1], [0, 0, 1, 1], [], []>} : vector<8x128xf32>, vector<128x128xf32>, vector<8x128xf32> -> vector<8x128xf32>
    %c0_21 = arith.constant 0 : index
    %c0_22 = arith.constant 0 : index
    %24 = vector.load %arg9[%c0_21, %c0_22] : memref<1x128xf32, #tpu.memory_space<vmem>>, vector<1x128xf32>
    %25 = vector.broadcast %24 : vector<1x128xf32> to vector<8x128xf32>
    %26 = arith.addf %23, %25 : vector<8x128xf32>
    %c0_23 = arith.constant 0 : index
    %c0_24 = arith.constant 0 : index
    %27 = vector.load %arg10[%c0_23, %c0_24] : memref<8x128xf32, #tpu.memory_space<vmem>>, vector<8x128xf32>
    tpu.vector_store %arg10[%c0_23, %c0_24], %26 {strides = array<i32>} : memref<8x128xf32, #tpu.memory_space<vmem>>, vector<8x128xf32>,
    return
  }
  func.func @transform_0(%arg0: i32) -> (i32, i32) {
    %c0_i32 = arith.constant 0 : i32
    %c0_i32_0 = arith.constant 0 : i32
    return %arg0, %c0_i32 : i32, i32
  }
  func.func @transform_1(%arg0: i32) -> (i32, i32) {
    %c0_i32 = arith.constant 0 : i32
    %c0_i32_0 = arith.constant 0 : i32
    %c0_i32_1 = arith.constant 0 : i32
    return %c0_i32, %c0_i32_0 : i32, i32
  }
  func.func @transform_2(%arg0: i32) -> (i32, i32) {
    %c0_i32 = arith.constant 0 : i32
    %c0_i32_0 = arith.constant 0 : i32
    %c0_i32_1 = arith.constant 0 : i32
    return %c0_i32, %c0_i32_0 : i32, i32
  }
  func.func @transform_3(%arg0: i32) -> (i32, i32) {
    %c0_i32 = arith.constant 0 : i32
    %c0_i32_0 = arith.constant 0 : i32
    %c0_i32_1 = arith.constant 0 : i32
    return %c0_i32, %c0_i32_0 : i32, i32
  }
  func.func @transform_4(%arg0: i32) -> (i32, i32) {
    %c0_i32 = arith.constant 0 : i32
    %c0_i32_0 = arith.constant 0 : i32
    %c0_i32_1 = arith.constant 0 : i32
    return %c0_i32, %c0_i32_0 : i32, i32
  }
  func.func @transform_5(%arg0: i32) -> (i32, i32) {
    %c0_i32 = arith.constant 0 : i32
    %c0_i32_0 = arith.constant 0 : i32
    %c0_i32_1 = arith.constant 0 : i32
    return %c0_i32, %c0_i32_0 : i32, i32
  }
  func.func @transform_6(%arg0: i32) -> (i32, i32) {
    %c0_i32 = arith.constant 0 : i32
    %c0_i32_0 = arith.constant 0 : i32
    %c0_i32_1 = arith.constant 0 : i32
    return %c0_i32, %c0_i32_0 : i32, i32
  }
  func.func @transform_7(%arg0: i32) -> (i32, i32) {
    %c0_i32 = arith.constant 0 : i32
    %c0_i32_0 = arith.constant 0 : i32
    %c0_i32_1 = arith.constant 0 : i32
    return %c0_i32, %c0_i32_0 : i32, i32
  }
  func.func @transform_8(%arg0: i32) -> (i32, i32) {
    %c0_i32 = arith.constant 0 : i32
    %c0_i32_0 = arith.constant 0 : i32
    %c0_i32_1 = arith.constant 0 : i32
    return %c0_i32, %c0_i32_0 : i32, i32
  }
  func.func @transform_9(%arg0: i32) -> (i32, i32) {
    %c0_i32 = arith.constant 0 : i32
    %c0_i32_0 = arith.constant 0 : i32
    return %arg0, %c0_i32 : i32, i32
  }
}

</mosaic_0001>

<bundles_post_ra>
// kernel: fused_mlp_forward.1
= control target key start
LH: loop header
LB: loop body
LE: loop exit
PB: predicated region body
PF: predicated region fallthrough
CT: control target
= control target key end

     0   :  { %14 = vsyncpa [#allocation3], 0  ;;  %s1117_s0 = inlined_call_operand.vmem [shape: f32[8,256], index: 0, kind: input, shape index: {}]   ;;  %s1118_s1 = inlined_call_operand.hbm [shape: f32[256,128], index: 1, kind: input, shape index: {}]   ;;  %s1119_s2 = inlined_call_operand.vmem [shape: f32[1,128], index: 2, kind: input, shape index: {}]   ;;  %s1120_s3 = inlined_call_operand.hbm [shape: f32[128,128], index: 3, kind: input, shape index: {}]   ;;  %s1121_s4 = inlined_call_operand.vmem [shape: f32[1,128], index: 4, kind: input, shape index: {}]   ;;  %s1122_s5 = inlined_call_operand.hbm [shape: f32[128,128], index: 5, kind: input, shape index: {}]   ;;  %s1123_s6 = inlined_call_operand.vmem [shape: f32[1,128], index: 6, kind: input, shape index: {}]   ;;  %s1124_s7 = inlined_call_operand.hbm [shape: f32[128,128], index: 7, kind: input, shape index: {}]   ;;  %s1125_s8 = inlined_call_operand.vmem [shape: f32[1,128], index: 8, kind: input, shape index: {}]   ;;  %s1126_s9 = inlined_call_operand.hbm [shape: f32[8,128], index: 9, kind: output, shape index: {}]  }
   0x1   :  { %15 = vsyncpa [#allocation6], 0 }
   0x2   :  { %16 = vsyncpa [#allocation9], 0 }
   0x3   :  { %17 = vsyncpa [#allocation4], 0  ;;  %s926_s30 = smov [#allocation5]   ;;  %s927_s11 = smov [#allocation2]  }
   0x4   :  { %s39_s10 = sshll.u32 %s926_s30, 4  ;;  %s25_s12 = sshll.u32 %s927_s11, 4  ;;  %s40_s10 = int_to_ptr.vmem [resolvable:$true] %s39_s10  ;;  %s986_s12 = int_to_ptr.vmem [resolvable:$true] %s25_s12 }
   0x5   :  { %s808_s15 = scalar_lea.hbm %s1120_s3, 2048 }
   0x6   :  { %p809_p0 = scmp.ne.s32.totalorder %s1120_s3, %s808_s15  ;;  %p812_p1 = scmp.lt.u32.totalorder %s808_s15, %s1120_s3 }
   0x8   :  { %p814_p2 = pnand %p812_p1, %p809_p0 }
   0xa   :  { %817 = shalt.err (!%p814_p2)
}
   0xb   :  { %s818_s20 = scalar_lea.vmem %s40_s10, 2048  ;;  %p823_p4 = scmp.lt.s32.totalorder %s40_s10, %s40_s10 }
   0xc   :  { %p819_p3 = scmp.ne.s32.totalorder %s40_s10, %s818_s20  ;;  %p824_p5 = scmp.lt.s32.totalorder %s818_s20, %s818_s20 }
   0xe   :  { %p825_p6 = por %p824_p5, %p823_p4 }
  0x10   :  { %p826_p7 = pnand %p825_p6, %p819_p3 }
  0x12   :  { %829 = shalt.err (!%p826_p7)
}
  0x13   :  { %s928_s21 = smov 128   ;;  %s929_s22 = smov 8  }
  0x14   :  { %45 = dma.hbm_to_vmem [thread:$0]  %s1120_s3, 2048, %s40_s10, [#allocation6], %s928_s21, %s928_s21, %s929_s22  }
  0x15   :  { %s830_s27 = scalar_lea.hbm %s1118_s1, 4096 }
  0x16   :  { %p831_p8 = scmp.ne.s32.totalorder %s1118_s1, %s830_s27  ;;  %p834_p9 = scmp.lt.u32.totalorder %s830_s27, %s1118_s1 }
  0x18   :  { %p836_p10 = pnand %p834_p9, %p831_p8 }
  0x1a   :  { %839 = shalt.err (!%p836_p10)
}
  0x1b   :  { %s840_s13 = scalar_lea.vmem %s986_s12, 4096  ;;  %p845_p12 = scmp.lt.s32.totalorder %s986_s12, %s986_s12 }
  0x1c   :  { %p841_p11 = scmp.ne.s32.totalorder %s986_s12, %s840_s13  ;;  %p846_p13 = scmp.lt.s32.totalorder %s840_s13, %s840_s13 }
  0x1e   :  { %p847_p0 = por %p846_p13, %p845_p12 }
  0x20   :  { %p848_p1 = pnand %p847_p0, %p841_p11 }
  0x22   :  { %851 = shalt.err (!%p848_p1)
}
  0x23   :  { %31 = dma.hbm_to_vmem [thread:$0]  %s1118_s1, 4096, %s986_s12, [#allocation3], %s928_s21, %s928_s21, %s929_s22  }
  0x24   :  { %s930_s14 = smov [#allocation7]   ;;  %s931_s16 = smov [#allocation8]  }
  0x25   :  { %s53_s15 = sshll.u32 %s930_s14, 4  ;;  %s67_s17 = sshll.u32 %s931_s16, 4  ;;  %s54_s15 = int_to_ptr.vmem [resolvable:$true] %s53_s15  ;;  %s1023_s17 = int_to_ptr.vmem [resolvable:$true] %s67_s17 }
  0x26   :  { %s852_s20 = scalar_lea.hbm %s1122_s5, 2048 }
  0x27   :  { %p853_p2 = scmp.ne.s32.totalorder %s1122_s5, %s852_s20  ;;  %p856_p3 = scmp.lt.u32.totalorder %s852_s20, %s1122_s5 }
  0x29   :  { %p858_p4 = pnand %p856_p3, %p853_p2 }
  0x2b   :  { %861 = shalt.err (!%p858_p4)
}
  0x2c   :  { %s862_s1 = scalar_lea.vmem %s54_s15, 2048  ;;  %p867_p6 = scmp.lt.s32.totalorder %s54_s15, %s54_s15 }
  0x2d   :  { %p863_p5 = scmp.ne.s32.totalorder %s54_s15, %s862_s1  ;;  %p868_p7 = scmp.lt.s32.totalorder %s862_s1, %s862_s1 }
  0x2f   :  { %p869_p8 = por %p868_p7, %p867_p6 }
  0x31   :  { %p870_p9 = pnand %p869_p8, %p863_p5 }
  0x33   :  { %873 = shalt.err (!%p870_p9)
}
  0x34   :  { %59 = dma.hbm_to_vmem [thread:$0]  %s1122_s5, 2048, %s54_s15, [#allocation6], %s928_s21, %s928_s21, %s929_s22  }
  0x35   :  { %s874_s30 = scalar_lea.hbm %s1124_s7, 2048 }
  0x36   :  { %p875_p10 = scmp.ne.s32.totalorder %s1124_s7, %s874_s30  ;;  %p878_p11 = scmp.lt.u32.totalorder %s874_s30, %s1124_s7 }
  0x38   :  { %p880_p12 = pnand %p878_p11, %p875_p10 }
  0x3a   :  { %883 = shalt.err (!%p880_p12)
}
  0x3b   :  { %s884_s14 = scalar_lea.vmem %s1023_s17, 2048  ;;  %p889_p0 = scmp.lt.s32.totalorder %s1023_s17, %s1023_s17 }
  0x3c   :  { %p885_p13 = scmp.ne.s32.totalorder %s1023_s17, %s884_s14  ;;  %p890_p1 = scmp.lt.s32.totalorder %s884_s14, %s884_s14 }
  0x3e   :  { %p891_p2 = por %p890_p1, %p889_p0 }
  0x40   :  { %p892_p3 = pnand %p891_p2, %p885_p13 }
  0x42   :  { %895 = shalt.err (!%p892_p3)
}
  0x43   :  { %73 = dma.hbm_to_vmem [thread:$0]  %s1124_s7, 2048, %s1023_s17, [#allocation9], %s928_s21, %s928_s21, %s929_s22  }
  0x44   :  { %918 = dma.done.wait [#allocation3], 4096  }
  0x45   :  { %919 = vsyncadd [#allocation3], 4294963200 }
  0x46   :  { %920 = dma.done.wait [#allocation6], 4096  }
  0x47   :  { %921 = vsyncadd [#allocation6], 4294963200 }
  0x48   :  { %922 = dma.done.wait [#allocation9], 2048  }
  0x49   :  { %923 = vsyncadd [#allocation9], 4294965248  ;;  %v932_v0 = vmov 0.0|0.0   ;;  %v106_v1 = vld [vmem:[#allocation2 + $0x80] sm:$0xff]  ;;  %v107_v2 = vld [vmem:[#allocation2 + $0x88] sm:$0xff]  ;;  %vm933_vm0 = vmmov 0  }
  0x4a   :  { %726 = vmatprep.subr.bf16.mxu1 %v932_v0  ;;  %v90_v3 = vld [vmem:[#allocation2] sm:$0xff]  ;;  %v694_v4 = vpack.c.bf16 %v107_v2, %v106_v1  ;;  %v91_v5 = vld [vmem:[#allocation2 + $0x8] sm:$0xff]  ;;  %v108_v6 = vld [vmem:[#allocation2 + $0x90] sm:$0xff]  ;;  %s935_s24 = smov [#allocation10]  }
  0x4b   :  { %v109_v7 = vld [vmem:[#allocation2 + $0x98] sm:$0xff]  ;;  %v696_v8 = vpack.c.bf16 %v91_v5, %v90_v3  ;;  %v92_v10 = vld [vmem:[#allocation2 + $0x10] sm:$0xff]  ;;  %v110_v12 = vld [vmem:[#allocation2 + $0xa0] sm:$0xff]  ;;  %s488_s25 = sshll.u32 %s935_s24, 4  ;;  %s489_s25 = int_to_ptr.vmem [resolvable:$true] %s488_s25 }
  0x4c   :  { %v698_v9 = vpack.c.bf16 %v109_v7, %v108_v6  ;;  %v93_v11 = vld [vmem:[#allocation2 + $0x18] sm:$0xff]  ;;  %695 = vmatprep.subr.bf16.mxu0 %v694_v4  ;;  %v111_v13 = vld [vmem:[#allocation2 + $0xa8] sm:$0xff]  ;;  %v94_v16 = vld [vmem:[#allocation2 + $0x20] sm:$0xff]  ;;  %s896_s26 = scalar_lea.vmem %s489_s25, 128  ;;  %p901_p5 = scmp.lt.s32.totalorder %s489_s25, %s489_s25 }
  0x4d   :  { %697 = vmatpush3.bf16.msra.mxu0 %v696_v8  ;;  %v700_v14 = vpack.c.bf16 %v93_v11, %v92_v10  ;;  %v702_v15 = vpack.c.bf16 %v111_v13, %v110_v12  ;;  %v95_v17 = vld [vmem:[#allocation2 + $0x28] sm:$0xff]  ;;  %v112_v18 = vld [vmem:[#allocation2 + $0xb0] sm:$0xff]  ;;  %v113_v19 = vld [vmem:[#allocation2 + $0xb8] sm:$0xff]  ;;  %v934_v12 = vmov 0.0   ;;  %p897_p4 = scmp.ne.s32.totalorder %s489_s25, %s896_s26  ;;  %p902_p6 = scmp.lt.s32.totalorder %s896_s26, %s896_s26 }
  0x4e   :  { %699 = vmatprep.subr.bf16.mxu0 %v698_v9  ;;  %v704_v20 = vpack.c.bf16 %v95_v17, %v94_v16  ;;  %v706_v21 = vpack.c.bf16 %v113_v19, %v112_v18  ;;  %v96_v22 = vld [vmem:[#allocation2 + $0x30] sm:$0xff]  ;;  %v97_v23 = vld [vmem:[#allocation2 + $0x38] sm:$0xff]  ;;  %v114_v24 = vld [vmem:[#allocation2 + $0xc0] sm:$0xff]  ;;  %621 = vmatprep.mubr.msk.f32.mxu1 %vm933_vm0, %v934_v12 }
  0x4f   :  { %v115_v25 = vld [vmem:[#allocation2 + $0xc8] sm:$0xff]  ;;  %v200_v27 = vld [vmem:[#allocation5] sm:$0xff]  ;;  %v708_v29 = vpack.c.bf16 %v97_v23, %v96_v22  ;;  %v202_v31 = vld [vmem:[#allocation5 + $0x10] sm:$0xff]  ;;  %p903_p7 = por %p902_p6, %p901_p5 }
  0x50   :  { %v89_v26 = vld [vmem:[%s1117_s0 + $0x8] sm:$0xff]  ;;  %v203_v32 = vld [vmem:[#allocation5 + $0x18] sm:$0xff]  ;;  %v710_v33 = vpack.c.bf16 %v115_v25, %v114_v24  ;;  %v98_v34 = vld [vmem:[#allocation2 + $0x40] sm:$0xff] }
  0x51   :  { %701 = vmatpush3.bf16.msra.mxu0 %v700_v14  ;;  %193 = vmatprep.mubr.f32.mxu0 %v89_v26  ;;  %v201_v28 = vld [vmem:[#allocation5 + $0x8] sm:$0xff]  ;;  %v116_v36 = vld [vmem:[#allocation2 + $0xd0] sm:$0xff]  ;;  %v117_v37 = vld [vmem:[#allocation2 + $0xd8] sm:$0xff]  ;;  %v730_v38 = vpack.c.bf16 %v203_v32, %v202_v31  ;;  %p904_p8 = pnand %p903_p7, %p897_p4 }
  0x52   :  { %703 = vmatprep.subr.bf16.mxu0 %v702_v15  ;;  %v727_v30 = vpack.c.bf16 %v201_v28, %v200_v27  ;;  %v99_v35 = vld [vmem:[#allocation2 + $0x48] sm:$0xff]  ;;  %v204_v39 = vld [vmem:[#allocation5 + $0x20] sm:$0xff]  ;;  %v714_v42 = vpack.c.bf16 %v117_v37, %v116_v36  ;;  %v100_v43 = vld [vmem:[#allocation2 + $0x50] sm:$0xff] }
  0x53   :  { %v205_v40 = vld [vmem:[#allocation5 + $0x28] sm:$0xff]  ;;  %v712_v41 = vpack.c.bf16 %v99_v35, %v98_v34  ;;  %v101_v44 = vld [vmem:[#allocation2 + $0x58] sm:$0xff]  ;;  %v118_v45 = vld [vmem:[#allocation2 + $0xe0] sm:$0xff] }
  0x54   :  { %728 = vmatpush3.bf16.msra.mxu1 %v727_v30  ;;  %v119_v46 = vld [vmem:[#allocation2 + $0xe8] sm:$0xff]  ;;  %v733_v47 = vpack.c.bf16 %v205_v40, %v204_v39  ;;  %v206_v48 = vld [vmem:[#allocation5 + $0x30] sm:$0xff]  ;;  %v207_v49 = vld [vmem:[#allocation5 + $0x38] sm:$0xff]  ;;  %v716_v50 = vpack.c.bf16 %v101_v44, %v100_v43 }
  0x55   :  { %705 = vmatpush3.bf16.msra.mxu0 %v704_v20  ;;  %729 = vmatprep.subr.bf16.mxu1 %v932_v0  ;;  %v718_v51 = vpack.c.bf16 %v119_v46, %v118_v45  ;;  %v102_v52 = vld [vmem:[#allocation2 + $0x60] sm:$0xff]  ;;  %v103_v53 = vld [vmem:[#allocation2 + $0x68] sm:$0xff]  ;;  %v120_v54 = vld [vmem:[#allocation2 + $0xf0] sm:$0xff]  ;;  %v736_v56 = vpack.c.bf16 %v207_v49, %v206_v48 }
  0x56   :  { %707 = vmatprep.subr.bf16.mxu0 %v706_v21  ;;  %v121_v55 = vld [vmem:[#allocation2 + $0xf8] sm:$0xff]  ;;  %v208_v57 = vld [vmem:[#allocation5 + $0x40] sm:$0xff]  ;;  %v209_v58 = vld [vmem:[#allocation5 + $0x48] sm:$0xff]  ;;  %v720_v59 = vpack.c.bf16 %v103_v53, %v102_v52 }
  0x57   :  { %v722_v60 = vpack.c.bf16 %v121_v55, %v120_v54  ;;  %v104_v61 = vld [vmem:[#allocation2 + $0x70] sm:$0xff]  ;;  %v105_v62 = vld [vmem:[#allocation2 + $0x78] sm:$0xff]  ;;  %v739_v63 = vpack.c.bf16 %v209_v58, %v208_v57  ;;  %v88_v5 = vld [vmem:[%s1117_s0] sm:$0xff] }
  0x58   :  { %731 = vmatpush3.bf16.msra.mxu1 %v730_v38  ;;  %v210_v1 = vld [vmem:[#allocation5 + $0x50] sm:$0xff]  ;;  %v211_v2 = vld [vmem:[#allocation5 + $0x58] sm:$0xff]  ;;  %v724_v3 = vpack.c.bf16 %v105_v62, %v104_v61  ;;  %v212_v6 = vld [vmem:[#allocation5 + $0x60] sm:$0xff] }
  0x59   :  { %709 = vmatpush3.bf16.msra.mxu0 %v708_v29  ;;  %732 = vmatprep.subr.bf16.mxu1 %v932_v0  ;;  %v742_v4 = vpack.c.bf16 %v211_v2, %v210_v1  ;;  %v213_v7 = vld [vmem:[#allocation5 + $0x68] sm:$0xff]  ;;  %v214_v9 = vld [vmem:[#allocation5 + $0x70] sm:$0xff]  ;;  %v215_v10 = vld [vmem:[#allocation5 + $0x78] sm:$0xff] }
  0x5a   :  { %711 = vmatprep.subr.bf16.mxu0 %v710_v33  ;;  %v745_v8 = vpack.c.bf16 %v213_v7, %v212_v6  ;;  %v748_v11 = vpack.c.bf16 %v215_v10, %v214_v9  ;;  %v294_v13 = vld [vmem:[#allocation7] sm:$0xff]  ;;  %v295_v14 = vld [vmem:[#allocation7 + $0x8] sm:$0xff]  ;;  %v296_v15 = vld [vmem:[#allocation7 + $0x10] sm:$0xff] }
  0x5b   :  { %v751_v16 = vpack.c.bf16 %v295_v14, %v294_v13  ;;  %v297_v17 = vld [vmem:[#allocation7 + $0x18] sm:$0xff]  ;;  %v298_v19 = vld [vmem:[#allocation7 + $0x20] sm:$0xff]  ;;  %v299_v20 = vld [vmem:[#allocation7 + $0x28] sm:$0xff] }
  0x5c   :  { %734 = vmatpush3.bf16.msra.mxu1 %v733_v47  ;;  %v754_v18 = vpack.c.bf16 %v297_v17, %v296_v15  ;;  %v757_v21 = vpack.c.bf16 %v299_v20, %v298_v19  ;;  %v300_v22 = vld [vmem:[#allocation7 + $0x30] sm:$0xff]  ;;  %v301_v23 = vld [vmem:[#allocation7 + $0x38] sm:$0xff]  ;;  %v302_v25 = vld [vmem:[#allocation7 + $0x40] sm:$0xff] }
  0x5d   :  { %713 = vmatpush3.bf16.msra.mxu0 %v712_v41  ;;  %735 = vmatprep.subr.bf16.mxu1 %v932_v0  ;;  %v760_v24 = vpack.c.bf16 %v301_v23, %v300_v22  ;;  %v303_v26 = vld [vmem:[#allocation7 + $0x48] sm:$0xff]  ;;  %v304_v28 = vld [vmem:[#allocation7 + $0x50] sm:$0xff]  ;;  %v305_v29 = vld [vmem:[#allocation7 + $0x58] sm:$0xff] }
  0x5e   :  { %715 = vmatprep.subr.bf16.mxu0 %v714_v42  ;;  %v763_v27 = vpack.c.bf16 %v303_v26, %v302_v25  ;;  %v766_v30 = vpack.c.bf16 %v305_v29, %v304_v28  ;;  %v306_v31 = vld [vmem:[#allocation7 + $0x60] sm:$0xff]  ;;  %v307_v32 = vld [vmem:[#allocation7 + $0x68] sm:$0xff]  ;;  %v308_v40 = vld [vmem:[#allocation7 + $0x70] sm:$0xff] }
  0x5f   :  { %v769_v33 = vpack.c.bf16 %v307_v32, %v306_v31  ;;  %v499_v35 = vld [vmem:[%s1119_s2] ss:$0 sm:$0xff]  ;;  %v309_v41 = vld [vmem:[#allocation7 + $0x78] sm:$0xff]  ;;  %v389_v44 = vld [vmem:[#allocation8 + $0x8] sm:$0xff] }
  0x60   :  { %737 = vmatpush3.bf16.msra.mxu1 %v736_v56  ;;  %v772_v42 = vpack.c.bf16 %v309_v41, %v308_v40  ;;  %v388_v43 = vld [vmem:[#allocation8] sm:$0xff]  ;;  %v390_v45 = vld [vmem:[#allocation8 + $0x10] sm:$0xff]  ;;  %v391_v47 = vld [vmem:[#allocation8 + $0x18] sm:$0xff] }
  0x61   :  { %717 = vmatpush3.bf16.msra.mxu0 %v716_v50  ;;  %738 = vmatprep.subr.bf16.mxu1 %v932_v0  ;;  %v775_v46 = vpack.c.bf16 %v389_v44, %v388_v43  ;;  %v778_v48 = vpack.c.bf16 %v391_v47, %v390_v45  ;;  %v392_v49 = vld [vmem:[#allocation8 + $0x20] sm:$0xff]  ;;  %v393_v50 = vld [vmem:[#allocation8 + $0x28] sm:$0xff]  ;;  %v394_v52 = vld [vmem:[#allocation8 + $0x30] sm:$0xff] }
  0x62   :  { %719 = vmatprep.subr.bf16.mxu0 %v718_v51  ;;  %v781_v51 = vpack.c.bf16 %v393_v50, %v392_v49  ;;  %v395_v53 = vld [vmem:[#allocation8 + $0x38] sm:$0xff]  ;;  %v396_v55 = vld [vmem:[#allocation8 + $0x40] sm:$0xff]  ;;  %v397_v56 = vld [vmem:[#allocation8 + $0x48] sm:$0xff] }
  0x63   :  { %v784_v54 = vpack.c.bf16 %v395_v53, %v394_v52  ;;  %v787_v57 = vpack.c.bf16 %v397_v56, %v396_v55  ;;  %v398_v58 = vld [vmem:[#allocation8 + $0x50] sm:$0xff]  ;;  %v400_v61 = vld [vmem:[#allocation8 + $0x60] sm:$0xff]  ;;  %v401_v62 = vld [vmem:[#allocation8 + $0x68] sm:$0xff] }
  0x64   :  { %740 = vmatpush3.bf16.msra.mxu1 %v739_v63  ;;  %v793_v63 = vpack.c.bf16 %v401_v62, %v400_v61  ;;  %v500_v1 = vld [vmem:[%s1121_s4] ss:$0 sm:$0xff]  ;;  %v402_v6 = vld [vmem:[#allocation8 + $0x70] sm:$0xff]  ;;  %v403_v7 = vld [vmem:[#allocation8 + $0x78] sm:$0xff] }
  0x65   :  { %721 = vmatpush3.bf16.msra.mxu0 %v720_v59  ;;  %741 = vmatprep.subr.bf16.mxu1 %v932_v0  ;;  %v399_v59 = vld [vmem:[#allocation8 + $0x58] sm:$0xff]  ;;  %v501_v9 = vld [vmem:[%s1123_s6] ss:$0 sm:$0xff] }
  0x66   :  { %723 = vmatprep.subr.bf16.mxu0 %v722_v60  ;;  %v790_v60 = vpack.c.bf16 %v399_v59, %v398_v58  ;;  %v502_v13 = vld [vmem:[%s1125_s8] ss:$0 sm:$0xff] }
  0x68   :  { %743 = vmatpush3.bf16.msra.mxu1 %v742_v4 }
  0x69   :  { %725 = vmatpush3.bf16.msra.mxu0 %v724_v3  ;;  %744 = vmatprep.subr.bf16.mxu1 %v932_v0 }
  0x6a   :  { %750 = vmatprep.subr.bf16.mxu0 %v932_v0 }
  0x6c   :  { %194 = vmatmul.mubr.f32.vlgmr.msra.gmra.mrb[0].mxu0 %v88_v5  ;;  %746 = vmatpush3.bf16.msra.mxu1 %v745_v8  ;;  %v796_v8 = vpack.c.bf16 %v403_v7, %v402_v6 }
  0x6d   :  { %747 = vmatprep.subr.bf16.mxu1 %v932_v0  ;;  %656 = vmatprep.mubr.msk.f32.mxu0 %vm933_vm0, %v934_v12 }
  0x6e   :  { %752 = vmatpush3.bf16.msra.mxu0 %v751_v16 }
  0x6f   :  { %753 = vmatprep.subr.bf16.mxu0 %v932_v0 }
  0x70   :  { %749 = vmatpush3.bf16.msra.mxu1 %v748_v11 }
  0x71   :  { %774 = vmatprep.subr.bf16.mxu1 %v932_v0 }
  0x72   :  { %755 = vmatpush3.bf16.msra.mxu0 %v754_v18 }
  0x73   :  { %756 = vmatprep.subr.bf16.mxu0 %v932_v0 }
  0x76   :  { %758 = vmatpush3.bf16.msra.mxu0 %v757_v21 }
  0x77   :  { %759 = vmatprep.subr.bf16.mxu0 %v932_v0 }
  0x7a   :  { %761 = vmatpush3.bf16.msra.mxu0 %v760_v24 }
  0x7b   :  { %762 = vmatprep.subr.bf16.mxu0 %v932_v0 }
  0x7e   :  { %764 = vmatpush3.bf16.msra.mxu0 %v763_v27 }
  0x7f   :  { %765 = vmatprep.subr.bf16.mxu0 %v932_v0 }
  0x82   :  { %767 = vmatpush3.bf16.msra.mxu0 %v766_v30 }
  0x83   :  { %768 = vmatprep.subr.bf16.mxu0 %v932_v0 }
  0x86   :  { %770 = vmatpush3.bf16.msra.mxu0 %v769_v33 }
  0x87   :  { %771 = vmatprep.subr.bf16.mxu0 %v932_v0 }
  0x8a   :  { %773 = vmatpush3.bf16.msra.mxu0 %v772_v42 }
 0x13f   :  { %v535_v34 = vpop.f32.mrb[0].mxu0 }
 0x140   :  { %v536_v36 = vpop.f32.mrb[1].mxu0 }
 0x141   :  { %v537_v37 = vadd.f32 %v536_v36, %v535_v34 }
 0x143   :  { %v196_v38 = vadd.f32 %v537_v37, %v499_v35 }
 0x145   :  { %v199_v39 = vmax.f32 %v196_v38, 0.0 }
 0x147   :  { %622 = vmatmul.mubr.f32.vlgmr.msra.gmra.mrb[0].mxu1 %v199_v39 }
 0x148   :  { %691 = vmatprep.mubr.msk.f32.mxu1 %vm933_vm0, %v934_v12  ;;  %776 = vmatpush3.bf16.msra.mxu1 %v775_v46 }
 0x149   :  { %777 = vmatprep.subr.bf16.mxu1 %v932_v0 }
 0x14c   :  { %779 = vmatpush3.bf16.msra.mxu1 %v778_v48 }
 0x14d   :  { %780 = vmatprep.subr.bf16.mxu1 %v932_v0 }
 0x150   :  { %782 = vmatpush3.bf16.msra.mxu1 %v781_v51 }
 0x151   :  { %783 = vmatprep.subr.bf16.mxu1 %v932_v0 }
 0x154   :  { %785 = vmatpush3.bf16.msra.mxu1 %v784_v54 }
 0x155   :  { %786 = vmatprep.subr.bf16.mxu1 %v932_v0 }
 0x158   :  { %788 = vmatpush3.bf16.msra.mxu1 %v787_v57 }
 0x159   :  { %789 = vmatprep.subr.bf16.mxu1 %v932_v0 }
 0x15c   :  { %791 = vmatpush3.bf16.msra.mxu1 %v790_v60 }
 0x15d   :  { %792 = vmatprep.subr.bf16.mxu1 %v932_v0 }
 0x160   :  { %794 = vmatpush3.bf16.msra.mxu1 %v793_v63 }
 0x161   :  { %795 = vmatprep.subr.bf16.mxu1 %v932_v0 }
 0x164   :  { %797 = vmatpush3.bf16.msra.mxu1 %v796_v8 }
 0x21a   :  { %v289_v2 = vpop.f32.mrb[0].mxu1 }
 0x21b   :  { %v290_v3 = vadd.f32 %v500_v1, %v289_v2  ;;  %v623_v4 = vpop.f32.mrb[1].mxu1 }
 0x21d   :  { %v293_v5 = vmax.f32 %v290_v3, 0.0 }
 0x21f   :  { %657 = vmatmul.mubr.f32.vlgmr.msra.gmra.mrb[2].mxu0 %v293_v5 }
 0x2f2   :  { %v383_v10 = vpop.f32.mrb[2].mxu0 }
 0x2f3   :  { %v384_v11 = vadd.f32 %v501_v9, %v383_v10  ;;  %v658_v0 = vpop.f32.mrb[3].mxu0 }
 0x2f5   :  { %v387_v12 = vmax.f32 %v384_v11, 0.0 }
 0x2f7   :  { %692 = vmatmul.mubr.f32.vlgmr.msra.gmra.mrb[2].mxu1 %v387_v12 }
 0x3ca   :  { %v477_v14 = vpop.f32.mrb[2].mxu1 }
 0x3cb   :  { %v478_v15 = vadd.f32 %v502_v13, %v477_v14  ;;  %v693_v16 = vpop.f32.mrb[3].mxu1 }
 0x3cd   :  { %481 = vst [vmem:[#allocation10] sm:$0xff] %v478_v15 }
 0x3ce   :  { %907 = shalt.err (!%p904_p8)
}
 0x3cf   :  { %s908_s12 = scalar_lea.hbm %s1126_s9, 128 }
 0x3d0   :  { %p909_p9 = scmp.ne.s32.totalorder %s1126_s9, %s908_s12  ;;  %p912_p10 = scmp.lt.u32.totalorder %s908_s12, %s1126_s9 }
 0x3d2   :  { %p914_p11 = pnand %p912_p10, %p909_p9 }
 0x3d4   :  { %917 = shalt.err (!%p914_p11)
}
 0x3d5   :  { %491 = dma.vmem_to_hbm [thread:$0]  %s489_s25, 128, %s1126_s9, [#allocation4]  }
 0x3d6   :  { %924 = dma.done.wait [#allocation4], 128  }
 0x3d7   :  { %925 = vsyncadd [#allocation4], 4294967168 }
 0x3d8   :  { %495 = vsyncpa [#allocation3], 1 }
 0x3d9   :  { %496 = vsyncpa [#allocation6], 1 }
 0x3da   :  { %497 = vsyncpa [#allocation9], 1 }
 0x3db   :  { %498 = vsyncpa [#allocation4], 1 }

</bundles_post_ra>
